<compile_context>
chip_gen: v6e
topology: v6e:2x2x1
jax: 0.10.0
libtpu: 0.0.40
codegen_flags: <defaults>
</compile_context>

<pallas_src>
import jax
import jax.numpy as jnp
from jax import lax
from jax.experimental import pallas as pl
from jax.experimental.pallas import tpu as pltpu

LANE = 128


def _round_up(a: int, m: int) -> int:
    return (a + m - 1) // m * m


def dis_embed_att_kernel(x_ref, w1_ref, b1_ref, w2_ref, b2_ref, o_ref):
    # fc1: cast the f32 x tile to bf16 in-register, MXU matmul, f32 accumulate.
    x_bf = x_ref[...].astype(jnp.bfloat16)                      # (TB, in_dim)
    h = jnp.dot(x_bf, w1_ref[...],
                preferred_element_type=jnp.float32)             # (TB, H) f32
    h = h + b1_ref[...]                                         # (1, H) broadcast
    h = jnp.where(h >= 0, h, 0.2 * h)                           # LeakyReLU(0.2)

    # fc2, transposed so the per-row scalar lands lane-dense:
    # (1, H) x (TB, H) contracting on H -> (1, TB).
    out_row = lax.dot_general(
        w2_ref[...], h.astype(jnp.bfloat16),
        dimension_numbers=(((1,), (1,)), ((), ())),
        preferred_element_type=jnp.float32)                     # (1, TB) f32
    out_row = out_row + b2_ref[...]                             # (1, 1) broadcast
    o_ref[...] = out_row.reshape(o_ref.shape).astype(o_ref.dtype)


def dis_embed_att(x, w1, b1, w2, b2, *,
                  block_b: int = 1024,
                  vmem_limit_bytes: int = 48 * 1024 * 1024):
    B, in_dim = x.shape
    nhF = w1.shape[1]
    H = _round_up(nhF, LANE)

    # Weights: pad hidden dim to a lane multiple and cast to bf16 once
    # (tiny, one-off; zero-padded columns/rows contribute exactly 0).
    w1_p = jnp.pad(w1, ((0, 0), (0, H - nhF))).astype(jnp.bfloat16)      # (in_dim, H)
    b1_p = jnp.pad(b1, (0, H - nhF)).reshape(1, H).astype(jnp.float32)   # (1, H)
    w2_row = jnp.pad(w2, ((0, H - nhF), (0, 0))).T.astype(jnp.bfloat16)  # (1, H)
    b2_p = b2.reshape(1, 1).astype(jnp.float32)                          # (1, 1)

    # ---- batch tile: multiple of 128 (lane-dense out), VMEM-budgeted, ----
    # ---- and split so the parallel axis has >= 2 steps when possible.  ----
    n_rows = _round_up(B, LANE)
    TB = min(_round_up(block_b, LANE), n_rows)
    if TB == n_rows and n_rows >= 2 * LANE:      # give both v7x TCs work
        TB = _round_up(n_rows // 2, LANE)
    weight_bytes = w1_p.size * 2 + b1_p.size * 4 + w2_row.size * 2 + b2_p.size * 4
    per_row_bytes = 2 * (in_dim * 4) + 2 * 4     # double-buffered x tile + out row
    avail = int(vmem_limit_bytes * 0.6) - 2 * weight_bytes
    if avail > 0:
        TB = max(LANE, min(TB, (avail // per_row_bytes) // LANE * LANE))
    grid_b = pl.cdiv(B, TB)

    cost = pl.CostEstimate(
        flops=2 * B * in_dim * nhF + 2 * B * nhF,
        transcendentals=0,
        bytes_accessed=(B * in_dim * 4            # x read (f32, unpadded)
                        + in_dim * H * 2 + H * 4 + H * 2 + 4   # weights/biases
                        + grid_b * TB * 4))       # lane-packed f32 output

    def make_call(single_buffer_weights: bool):
        if single_buffer_weights:
            def const_spec(shape):
                return pl.BlockSpec(shape, lambda *_: (0,) * len(shape),
                                    pipeline_mode=pl.Buffered(1))
        else:
            def const_spec(shape):
                return pl.BlockSpec(shape, lambda *_: (0,) * len(shape))

        return pl.pallas_call(
            dis_embed_att_kernel,
            out_shape=jax.ShapeDtypeStruct((grid_b, 1, TB), jnp.float32),
            grid_spec=pltpu.PrefetchScalarGridSpec(
                num_scalar_prefetch=0,
                grid=(grid_b,),
                in_specs=[
                    pl.BlockSpec((TB, in_dim), lambda i: (i, 0)),  # x tile walks rows
                    const_spec((in_dim, H)),                       # W1 resident
                    const_spec((1, H)),                            # b1 resident
                    const_spec((1, H)),                            # W2 (row) resident
                    const_spec((1, 1)),                            # b2 resident
                ],
                out_specs=pl.BlockSpec((1, 1, TB), lambda i: (i, 0, 0)),
            ),
            compiler_params=pltpu.CompilerParams(
                dimension_semantics=("parallel",),
                vmem_limit_bytes=vmem_limit_bytes),
            cost_estimate=cost,
        )

    try:
        out3 = make_call(True)(x, w1_p, b1_p, w2_row, b2_p)
    except Exception:
        # Fallback if this JAX build rejects pipeline_mode=pl.Buffered(1)
        # (default double-buffered resident weights; still correct).
        out3 = make_call(False)(x, w1_p, b1_p, w2_row, b2_p)

    # (grid_b, 1, TB) row-slots -> (B, 1); partial-block garbage lanes sliced off.
    return out3.reshape(grid_b * TB)[:B].reshape(B, 1)


def reference(x, w1, b1, w2, b2):
    h = x @ w1 + b1
    h = jnp.where(h >= 0, h, 0.2 * h)
    return h @ w2 + b2


if __name__ == "__main__":
    # Small synthetic config: attSize=16 -> input dim 32, nhF=64, batch=200
    # (exercises 2 grid steps + a partial last block).
    attSize, nhF, B = 16, 64, 200
    in_dim = 2 * attSize

    key = jax.random.PRNGKey(0)
    k_x, k_w1, k_w2 = jax.random.split(key, 3)

    # weights_init: Linear weights ~ N(0, 0.02), biases = 0.
    x = jax.random.normal(k_x, (B, in_dim), dtype=jnp.float32)
    w1 = 0.02 * jax.random.normal(k_w1, (in_dim, nhF), dtype=jnp.float32)
    b1 = jnp.zeros((nhF,), dtype=jnp.float32)
    w2 = 0.02 * jax.random.normal(k_w2, (nhF, 1), dtype=jnp.float32)
    b2 = jnp.zeros((1,), dtype=jnp.float32)

    out = jax.block_until_ready(dis_embed_att(x, w1, b1, w2, b2))
    ref = reference(x, w1, b1, w2, b2)

    assert out.shape == (B, 1)
    # bf16 matmul inputs vs f32 reference -> modest tolerance.
    assert jnp.allclose(out, ref, atol=5e-3, rtol=5e-2), \
        float(jnp.max(jnp.abs(out - ref)))

    print("KERNEL_OK")
</pallas_src>

<mosaic_0001>
module attributes {stable_mosaic.version = 11 : i64} {
  func.func @dis_embed_att_kernel(%arg0: i32, %arg1: memref<128x32xf32, #tpu.memory_space<vmem>>, %arg2: memref<32x128xbf16, #tpu.memory_space<vmem>>, %arg3: memref<1x128xf32, #tpu.memory_space<vmem>>, %arg4: memref<1x128xbf16, #tpu.memory_space<vmem>>, %arg5: memref<1x1xf32, #tpu.memory_space<vmem>>, %arg6: memref<1x1x128xf32, #tpu.memory_space<vmem>>) attributes {dimension_semantics = [#tpu.dimension_semantics<parallel>], iteration_bounds = array<i64: 2>, scalar_prefetch = 0 : i64, scratch_operands = 0 : i64, tpu.core_type = #tpu.core_type<tc>, window_params = [{transform_indices = @transform_0, window_bounds = array<i64: 128, 32>}, {pipeline_mode = #tpu.pipeline_mode<synchronous>, transform_indices = @transform_1, window_bounds = array<i64: 32, 128>}, {pipeline_mode = #tpu.pipeline_mode<synchronous>, transform_indices = @transform_2, window_bounds = array<i64: 1, 128>}, {pipeline_mode = #tpu.pipeline_mode<synchronous>, transform_indices = @transform_3, window_bounds = array<i64: 1, 128>}, {pipeline_mode = #tpu.pipeline_mode<synchronous>, transform_indices = @transform_4, window_bounds = array<i64: 1, 1>}, {transform_indices = @transform_5, window_bounds = array<i64: 1, 1, 128>}]} {
    %c0 = arith.constant 0 : index
    %c0_0 = arith.constant 0 : index
    %0 = vector.load %arg1[%c0, %c0_0] : memref<128x32xf32, #tpu.memory_space<vmem>>, vector<128x32xf32>
    %1 = arith.truncf %0 : vector<128x32xf32> to vector<128x32xbf16>
    %c0_1 = arith.constant 0 : index
    %c0_2 = arith.constant 0 : index
    %2 = vector.load %arg2[%c0_1, %c0_2] : memref<32x128xbf16, #tpu.memory_space<vmem>>, vector<32x128xbf16>
    %cst = arith.constant dense<0.000000e+00> : vector<128x128xf32>
    %3 = tpu.matmul %1, %2, %cst {dimension_numbers = #tpu.dot_dimension_numbers<[1], [0], [0], [1], [0, 0, 1, 1], [], []>} : vector<128x32xbf16>, vector<32x128xbf16>, vector<128x128xf32> -> vector<128x128xf32>
    %c0_3 = arith.constant 0 : index
    %c0_4 = arith.constant 0 : index
    %4 = vector.load %arg3[%c0_3, %c0_4] : memref<1x128xf32, #tpu.memory_space<vmem>>, vector<1x128xf32>
    %5 = vector.broadcast %4 : vector<1x128xf32> to vector<128x128xf32>
    %6 = arith.addf %3, %5 : vector<128x128xf32>
    %cst_5 = arith.constant 0.000000e+00 : f32
    %7 = vector.broadcast %cst_5 : f32 to vector<128x128xf32>
    %8 = arith.cmpf oge, %6, %7 : vector<128x128xf32>
    %cst_6 = arith.constant 2.000000e-01 : f32
    %9 = vector.broadcast %cst_6 : f32 to vector<128x128xf32>
    %10 = arith.mulf %9, %6 : vector<128x128xf32>
    %11 = arith.select %8, %6, %10 : vector<128x128xi1>, vector<128x128xf32>
    %c0_7 = arith.constant 0 : index
    %c0_8 = arith.constant 0 : index
    %12 = vector.load %arg4[%c0_7, %c0_8] : memref<1x128xbf16, #tpu.memory_space<vmem>>, vector<1x128xbf16>
    %13 = arith.truncf %11 : vector<128x128xf32> to vector<128x128xbf16>
    %cst_9 = arith.constant dense<0.000000e+00> : vector<1x128xf32>
    %14 = tpu.matmul %12, %13, %cst_9 {dimension_numbers = #tpu.dot_dimension_numbers<[1], [1], [0], [0], [0, 0, 1, 0], [], []>} : vector<1x128xbf16>, vector<128x128xbf16>, vector<1x128xf32> -> vector<1x128xf32>
    %c0_10 = arith.constant 0 : index
    %c0_11 = arith.constant 0 : index
    %15 = vector.load %arg5[%c0_10, %c0_11] : memref<1x1xf32, #tpu.memory_space<vmem>>, vector<1x1xf32>
    %16 = vector.broadcast %15 : vector<1x1xf32> to vector<1x128xf32>
    %17 = arith.addf %14, %16 : vector<1x128xf32>
    %18 = vector.shape_cast %17 : vector<1x128xf32> to vector<1x1x128xf32>
    %c0_12 = arith.constant 0 : index
    %c0_13 = arith.constant 0 : index
    %c0_14 = arith.constant 0 : index
    %19 = vector.load %arg6[%c0_12, %c0_13, %c0_14] : memref<1x1x128xf32, #tpu.memory_space<vmem>>, vector<1x1x128xf32>
    tpu.vector_store %arg6[%c0_12, %c0_13, %c0_14], %18 {strides = array<i32>} : memref<1x1x128xf32, #tpu.memory_space<vmem>>, vector<1x1x128xf32>,
    return
  }
  func.func @transform_0(%arg0: i32) -> (i32, i32) {
    %c0_i32 = arith.constant 0 : i32
    %c0_i32_0 = arith.constant 0 : i32
    return %arg0, %c0_i32 : i32, i32
  }
  func.func @transform_1(%arg0: i32) -> (i32, i32) {
    %c0_i32 = arith.constant 0 : i32
    %c0_i32_0 = arith.constant 0 : i32
    %c0_i32_1 = arith.constant 0 : i32
    return %c0_i32, %c0_i32_0 : i32, i32
  }
  func.func @transform_2(%arg0: i32) -> (i32, i32) {
    %c0_i32 = arith.constant 0 : i32
    %c0_i32_0 = arith.constant 0 : i32
    %c0_i32_1 = arith.constant 0 : i32
    return %c0_i32, %c0_i32_0 : i32, i32
  }
  func.func @transform_3(%arg0: i32) -> (i32, i32) {
    %c0_i32 = arith.constant 0 : i32
    %c0_i32_0 = arith.constant 0 : i32
    %c0_i32_1 = arith.constant 0 : i32
    return %c0_i32, %c0_i32_0 : i32, i32
  }
  func.func @transform_4(%arg0: i32) -> (i32, i32) {
    %c0_i32 = arith.constant 0 : i32
    %c0_i32_0 = arith.constant 0 : i32
    %c0_i32_1 = arith.constant 0 : i32
    return %c0_i32, %c0_i32_0 : i32, i32
  }
  func.func @transform_5(%arg0: i32) -> (i32, i32, i32) {
    %c0_i32 = arith.constant 0 : i32
    %c0_i32_0 = arith.constant 0 : i32
    %c0_i32_1 = arith.constant 0 : i32
    return %arg0, %c0_i32, %c0_i32_0 : i32, i32, i32
  }
}

module attributes {stable_mosaic.version = 11 : i64} {
  func.func @dis_embed_att_kernel(%arg0: i32, %arg1: memref<128x32xf32, #tpu.memory_space<vmem>>, %arg2: memref<32x128xbf16, #tpu.memory_space<vmem>>, %arg3: memref<1x128xf32, #tpu.memory_space<vmem>>, %arg4: memref<1x128xbf16, #tpu.memory_space<vmem>>, %arg5: memref<1x1xf32, #tpu.memory_space<vmem>>, %arg6: memref<1x1x128xf32, #tpu.memory_space<vmem>>) attributes {dimension_semantics = [#tpu.dimension_semantics<parallel>], iteration_bounds = array<i64: 2>, scalar_prefetch = 0 : i64, scratch_operands = 0 : i64, tpu.core_type = #tpu.core_type<tc>, window_params = [{transform_indices = @transform_0, window_bounds = array<i64: 128, 32>}, {pipeline_mode = #tpu.pipeline_mode<synchronous>, transform_indices = @transform_1, window_bounds = array<i64: 32, 128>}, {pipeline_mode = #tpu.pipeline_mode<synchronous>, transform_indices = @transform_2, window_bounds = array<i64: 1, 128>}, {pipeline_mode = #tpu.pipeline_mode<synchronous>, transform_indices = @transform_3, window_bounds = array<i64: 1, 128>}, {pipeline_mode = #tpu.pipeline_mode<synchronous>, transform_indices = @transform_4, window_bounds = array<i64: 1, 1>}, {transform_indices = @transform_5, window_bounds = array<i64: 1, 1, 128>}]} {
    %c0 = arith.constant 0 : index
    %c0_0 = arith.constant 0 : index
    %0 = vector.load %arg1[%c0, %c0_0] : memref<128x32xf32, #tpu.memory_space<vmem>>, vector<128x32xf32>
    %1 = arith.truncf %0 : vector<128x32xf32> to vector<128x32xbf16>
    %c0_1 = arith.constant 0 : index
    %c0_2 = arith.constant 0 : index
    %2 = vector.load %arg2[%c0_1, %c0_2] : memref<32x128xbf16, #tpu.memory_space<vmem>>, vector<32x128xbf16>
    %cst = arith.constant dense<0.000000e+00> : vector<128x128xf32>
    %3 = tpu.matmul %1, %2, %cst {dimension_numbers = #tpu.dot_dimension_numbers<[1], [0], [0], [1], [0, 0, 1, 1], [], []>} : vector<128x32xbf16>, vector<32x128xbf16>, vector<128x128xf32> -> vector<128x128xf32>
    %c0_3 = arith.constant 0 : index
    %c0_4 = arith.constant 0 : index
    %4 = vector.load %arg3[%c0_3, %c0_4] : memref<1x128xf32, #tpu.memory_space<vmem>>, vector<1x128xf32>
    %5 = vector.broadcast %4 : vector<1x128xf32> to vector<128x128xf32>
    %6 = arith.addf %3, %5 : vector<128x128xf32>
    %cst_5 = arith.constant 0.000000e+00 : f32
    %7 = vector.broadcast %cst_5 : f32 to vector<128x128xf32>
    %8 = arith.cmpf oge, %6, %7 : vector<128x128xf32>
    %cst_6 = arith.constant 2.000000e-01 : f32
    %9 = vector.broadcast %cst_6 : f32 to vector<128x128xf32>
    %10 = arith.mulf %9, %6 : vector<128x128xf32>
    %11 = arith.select %8, %6, %10 : vector<128x128xi1>, vector<128x128xf32>
    %c0_7 = arith.constant 0 : index
    %c0_8 = arith.constant 0 : index
    %12 = vector.load %arg4[%c0_7, %c0_8] : memref<1x128xbf16, #tpu.memory_space<vmem>>, vector<1x128xbf16>
    %13 = arith.truncf %11 : vector<128x128xf32> to vector<128x128xbf16>
    %cst_9 = arith.constant dense<0.000000e+00> : vector<1x128xf32>
    %14 = tpu.matmul %12, %13, %cst_9 {dimension_numbers = #tpu.dot_dimension_numbers<[1], [1], [0], [0], [0, 0, 1, 0], [], []>} : vector<1x128xbf16>, vector<128x128xbf16>, vector<1x128xf32> -> vector<1x128xf32>
    %c0_10 = arith.constant 0 : index
    %c0_11 = arith.constant 0 : index
    %15 = vector.load %arg5[%c0_10, %c0_11] : memref<1x1xf32, #tpu.memory_space<vmem>>, vector<1x1xf32>
    %16 = vector.broadcast %15 : vector<1x1xf32> to vector<1x128xf32>
    %17 = arith.addf %14, %16 : vector<1x128xf32>
    %18 = vector.shape_cast %17 : vector<1x128xf32> to vector<1x1x128xf32>
    %c0_12 = arith.constant 0 : index
    %c0_13 = arith.constant 0 : index
    %c0_14 = arith.constant 0 : index
    %19 = vector.load %arg6[%c0_12, %c0_13, %c0_14] : memref<1x1x128xf32, #tpu.memory_space<vmem>>, vector<1x1x128xf32>
    tpu.vector_store %arg6[%c0_12, %c0_13, %c0_14], %18 {strides = array<i32>} : memref<1x1x128xf32, #tpu.memory_space<vmem>>, vector<1x1x128xf32>,
    return
  }
  func.func @transform_0(%arg0: i32) -> (i32, i32) {
    %c0_i32 = arith.constant 0 : i32
    %c0_i32_0 = arith.constant 0 : i32
    return %arg0, %c0_i32 : i32, i32
  }
  func.func @transform_1(%arg0: i32) -> (i32, i32) {
    %c0_i32 = arith.constant 0 : i32
    %c0_i32_0 = arith.constant 0 : i32
    %c0_i32_1 = arith.constant 0 : i32
    return %c0_i32, %c0_i32_0 : i32, i32
  }
  func.func @transform_2(%arg0: i32) -> (i32, i32) {
    %c0_i32 = arith.constant 0 : i32
    %c0_i32_0 = arith.constant 0 : i32
    %c0_i32_1 = arith.constant 0 : i32
    return %c0_i32, %c0_i32_0 : i32, i32
  }
  func.func @transform_3(%arg0: i32) -> (i32, i32) {
    %c0_i32 = arith.constant 0 : i32
    %c0_i32_0 = arith.constant 0 : i32
    %c0_i32_1 = arith.constant 0 : i32
    return %c0_i32, %c0_i32_0 : i32, i32
  }
  func.func @transform_4(%arg0: i32) -> (i32, i32) {
    %c0_i32 = arith.constant 0 : i32
    %c0_i32_0 = arith.constant 0 : i32
    %c0_i32_1 = arith.constant 0 : i32
    return %c0_i32, %c0_i32_0 : i32, i32
  }
  func.func @transform_5(%arg0: i32) -> (i32, i32, i32) {
    %c0_i32 = arith.constant 0 : i32
    %c0_i32_0 = arith.constant 0 : i32
    %c0_i32_1 = arith.constant 0 : i32
    return %arg0, %c0_i32, %c0_i32_0 : i32, i32, i32
  }
}

</mosaic_0001>

<bundles_post_ra>
// kernel: tpu_custom_call.1
= control target key start
LH: loop header
LB: loop body
LE: loop exit
PB: predicated region body
PF: predicated region fallthrough
CT: control target
= control target key end

     0   :  { %s999_s0 = inlined_call_operand.vmem [shape: f32[200,32], index: 0, kind: input, shape index: {}]   ;;  %s1000_s1 = inlined_call_operand.vmem [shape: bf16[32,128], index: 1, kind: input, shape index: {}]   ;;  %s1001_s2 = inlined_call_operand.vmem [shape: f32[1,128], index: 2, kind: input, shape index: {}]   ;;  %s1002_s3 = inlined_call_operand.vmem [shape: bf16[1,128], index: 3, kind: input, shape index: {}]   ;;  %s1003_s4 = inlined_call_operand.<no memory space> [shape: f32[1,1], index: 4, kind: input, shape index: {}]   ;;  %s1004_s5 = inlined_call_operand.hbm [shape: f32[2,1,128], index: 5, kind: output, shape index: {}]  }
   0x1   :  { %v10_v0 = vstv %s1003_s4 }
   0x2   :  { %11 = vst [vmem:[#allocation2] sm:$0x1] %v10_v0 }
   0x3   :  { %12 = vsyncpa [#allocation4], 0 }
   0x4   :  { %14 = vsyncpa [#allocation4 + $0x1], 0  ;;  %s815_s20 = smov 0   ;;  %s817_s21 = smov 0  }
   0x5   :  { %s819_s22 = smov 0   ;;  %s821_s23 = smov 0  }
   0x6 LB: > { %s591_s4 = sadd.s32 4294967295, %s776_s23   ;;  %s592_s24 = sadd.s32 4294967294, %s776_s23   ;;  %s776_s23 = sphi %s821_s23, %s1010_s23   ;;  %s772_s22 = sphi %s819_s22, %s1009_s22   ;;  %s768_s21 = sphi %s817_s21, %s1008_s21   ;;  %s764_s20 = sphi %s815_s20, %s1007_s20  }
   0x7   : > { %s838_s25 = sadd.s32 1, %s776_s23   ;;  %s137_s26 = sadd.s32 1, %s772_s22 }
   0x8   : > { %s134_s27 = ssub.s32 %s776_s23, %s838_s25  ;;  %p147_p0 = scmp.ne.s32.totalorder %s772_s22, %s768_s21 }
   0x9   : > { %p135_p1 = scmp.eq.s32.totalorder %s134_s27, 0  ;;  %p148_p2 = scmp.eq.s32.totalorder %s591_s4, 1 }
   0xa   : > { %p153_p3 = scmp.ne.s32.totalorder %s768_s21, %s764_s20  ;;  %p154_p4 = scmp.eq.s32.totalorder %s592_s24, 1 }
   0xb   : > { %s848_s28 = scalar_select %p135_p1, %s772_s22, %s137_s26  }
   0xc   : > { %p850_p5 = por %p148_p2, %p147_p0  ;;  %p854_p6 = por %p154_p4, %p153_p3 }
   0xd   : > { %p595_p7 = scmp.ge.s32.totalorder %s776_s23, 1  ;;  %p201_p8 = scmp.lt.s32.totalorder %s776_s23, 3 }
   0xf   : > { %p202_p9 = pnand %p595_p7, %p201_p8 }
  0x10   : > { %s863_s8 = sshll.u32 (!%p202_p9), %s591_s4, 4  ;;  %s230_s4 = sand.u32 (!%p202_p9), 1, %s768_s21  }
  0x11   : > { %205 = sbr.rel (%p202_p9) target bundleno = 531 (0x213), region = 40  ;;  %p237_p10 = scmp.lt.s32.totalorder (!%p202_p9), %s863_s8, 24 }
  0x12   : > { %s231_s24 = scalar_lea.vmem (!%p202_p9), [#allocation3], %s230_s4  ;;  %s958_s7 = scalar_lea.hbm (!%p202_p9), %s1004_s5, %s863_s8 }
  0x13   : > { %s537_s26 = sshll.u32 (!%p202_p9), %s231_s24, 4  ;;  %s525_s9 = scalar_lea.sflag (!%p202_p9), [#allocation4], %s230_s4  ;;  %s960_s26 = int_to_ptr.vmem [resolvable:$true] %s537_s26 }
  0x14   : > { %s716_s10 = scalar_lea.vmem (!%p202_p9), %s960_s26, 16 }
  0x15   : > { %p717_p11 = scmp.ne.s32.totalorder (!%p202_p9), %s960_s26, %s716_s10 }
  0x16   : > { %v714_v1 = vld [vmem:[%s1000_s1 + $0x8] sm:$0xff]   ;;  %v715_v2 = vld [vmem:[%s1000_s1] sm:$0xff]   ;;  %s238_s11 = scalar_select %p237_p10, %s863_s8, 24  ;;  %vm294_vm0 = vcmask 261120   ;;  %v778_v27 = vmov 0.0   ;;  %vm779_vm1 = vmmov 0  }
  0x17   : > { %631 = vmatprep.subr.bf16.mxu0 %v714_v1  ;;  %651 = vmatprep.subr.bf16.mxu1 %v778_v27  ;;  %v473_v28 = vld [vmem:[#allocation2] sm:$0x1]  ;;  %v780_v29 = vmov 0   ;;  %p718_p12 = pnand %p717_p11, %p850_p5 }
  0x18   : > { %632 = vmatpush3.bf16.msra.mxu0 %v714_v1  ;;  %s597_s12 = sshll.u32 %s238_s11, 3  ;;  %667 = vmatprep.mubr.msk.bf16.mxu1 %vm779_vm1, %v778_v27  ;;  %v904_v30 = vld [vmem:[%s1001_s2] ss:$0 sm:$0xff]  ;;  %s781_s11 = smov [#allocation3]  }
  0x19   : > { %633 = vmatprep.subr.bf16.mxu0 %v715_v2  ;;  %s873_s15 = scalar_lea.vmem %s999_s0, %s597_s12  ;;  %713 = vset.pattern.permute.xlu0 %v780_v29  ;;  %p719_p13 = pneg %p718_p12 }
  0x1a   : > { %v247_v3 = vld [vmem:[%s873_s15] sm:$0xff]  ;;  %v248_v4 = vld [vmem:[%s873_s15 + $0x8] sm:$0xff]  ;;  %v249_v5 = vld [vmem:[%s873_s15 + $0x10] sm:$0xff]  ;;  %476 = vperm.xlu0 %713, %v473_v28   ;;  %s720_s12 = sshll.u32 %s781_s11, 4  ;;  %s721_s12 = int_to_ptr.vmem [resolvable:$false] %s720_s12 }
  0x1b   : > { %v263_v6 = vpack.c.bf16 %v248_v4, %v247_v3  ;;  %v250_v7 = vld [vmem:[%s873_s15 + $0x18] sm:$0xff]  ;;  %v251_v8 = vld [vmem:[%s873_s15 + $0x20] sm:$0xff]  ;;  %v252_v9 = vld [vmem:[%s873_s15 + $0x28] sm:$0xff]  ;;  %s722_s13 = scalar_lea.vmem %s721_s12, 32  ;;  %p723_p0 = scmp.lt.s32.totalorder %s960_s26, %s721_s12 }
  0x1c   : > { %634 = vmatpush3.bf16.msra.mxu0 %v715_v2  ;;  %v264_v10 = vpack.c.bf16 %v250_v7, %v249_v5  ;;  %v265_v11 = vpack.c.bf16 %v252_v9, %v251_v8  ;;  %v253_v12 = vld [vmem:[%s873_s15 + $0x30] sm:$0xff]  ;;  %v254_v13 = vld [vmem:[%s873_s15 + $0x38] sm:$0xff]  ;;  %v255_v14 = vld [vmem:[%s873_s15 + $0x40] sm:$0xff]  ;;  %p724_p1 = scmp.lt.s32.totalorder %s722_s13, %s716_s10 }
  0x1d   : > { %635 = vmatprep.mubr.msk.bf16.mxu0 %vm294_vm0, %v263_v6  ;;  %v256_v15 = vld [vmem:[%s873_s15 + $0x48] sm:$0xff]  ;;  %v266_v16 = vpack.c.bf16 %v254_v13, %v253_v12  ;;  %v257_v18 = vld [vmem:[%s873_s15 + $0x50] sm:$0xff]  ;;  %v258_v19 = vld [vmem:[%s873_s15 + $0x58] sm:$0xff] }
  0x1e   : > { %v267_v17 = vpack.c.bf16 %v256_v15, %v255_v14  ;;  %v259_v20 = vld [vmem:[%s873_s15 + $0x60] sm:$0xff]  ;;  %v260_v21 = vld [vmem:[%s873_s15 + $0x68] sm:$0xff]  ;;  %v268_v22 = vpack.c.bf16 %v258_v19, %v257_v18  ;;  %v261_v24 = vld [vmem:[%s873_s15 + $0x70] sm:$0xff]  ;;  %p725_p2 = por %p724_p1, %p723_p0 }
  0x1f   : > { %636 = vmatmul.mubr.msk.bf16.vlgmr.msra.gmra.mxu0 %vm294_vm0, %v264_v10  ;;  %v269_v23 = vpack.c.bf16 %v260_v21, %v259_v20  ;;  %v262_v25 = vld [vmem:[%s873_s15 + $0x78] sm:$0xff] }
  0x20   : > { %639 = vmatprep.mubr.msk.bf16.mxu0 %vm294_vm0, %v265_v11  ;;  %v270_v26 = vpack.c.bf16 %v262_v25, %v261_v24  ;;  %p726_p3 = pnand %p725_p2, %p719_p13 }
  0x27   : > { %640 = vmatmul.mubr.msk.bf16.gmra.mxu0 %vm294_vm0, %v266_v16 }
  0x28   : > { %643 = vmatprep.mubr.msk.bf16.mxu0 %vm294_vm0, %v267_v17 }
  0x2f   : > { %644 = vmatmul.mubr.msk.bf16.gmra.mxu0 %vm294_vm0, %v268_v22 }
  0x30   : > { %647 = vmatprep.mubr.msk.bf16.mxu0 %vm294_vm0, %v269_v23 }
  0x37   : > { %648 = vmatmul.mubr.msk.bf16.gmra.mxu0 %vm294_vm0, %v270_v26 }
  0xdf   : > { %v637_v31 = vpop.f32.mrf.mxu0 }
  0xe0   : > { %v362_v32 = vadd.f32 %v637_v31, %v904_v30 }
  0xe1   : > { %v353_v33 = vpop.f32.mrf.mxu0 }
  0xe2   : > { %v354_v34 = vadd.f32 %v904_v30, %v353_v33  ;;  %v434_v36 = vmul.f32 0.2, %v362_v32  ;;  %vm418_vm2 = vcmp.ge.f32.partialorder %v362_v32, 0.0 }
  0xe3   : > { %v638_v35 = vpop.f32.mrf.mxu0 }
  0xe4   : > { %v365_v37 = vadd.f32 %v638_v35, %v904_v30  ;;  %v432_v39 = vmul.f32 0.2, %v354_v34  ;;  %vm416_vm4 = vcmp.ge.f32.partialorder %v354_v34, 0.0  ;;  %v910_v44 = vsel %vm418_vm2, %v362_v32, %v434_v36 }
  0xe5   : > { %v356_v38 = vpop.f32.mrf.mxu0 }
  0xe6   : > { %vm419_vm3 = vcmp.ge.f32.partialorder %v365_v37, 0.0  ;;  %v435_v40 = vmul.f32 0.2, %v365_v37  ;;  %v357_v41 = vadd.f32 %v904_v30, %v356_v38  ;;  %v918_v48 = vsel %vm416_vm4, %v354_v34, %v432_v39 }
  0xe7   : > { %v641_v42 = vpop.f32.mrf.mxu0 }
  0xe8   : > { %vm417_vm5 = vcmp.ge.f32.partialorder %v357_v41, 0.0  ;;  %v433_v43 = vmul.f32 0.2, %v357_v41  ;;  %v912_v45 = vsel %vm419_vm3, %v365_v37, %v435_v40  ;;  %v378_v24 = vadd.f32 %v641_v42, %v904_v30 }
  0xe9   : > { %v914_v46 = vpop.f32.mrf.mxu0  ;;  %v466_v47 = vpack.c.bf16 %v912_v45, %v910_v44 }
  0xea   : > { %v920_v49 = vsel %vm417_vm5, %v357_v41, %v433_v43  ;;  %v438_v29 = vmul.f32 0.2, %v378_v24  ;;  %vm422_vm15 = vcmp.ge.f32.partialorder %v378_v24, 0.0  ;;  %v370_v33 = vadd.f32 %v904_v30, %v914_v46  ;;  %v477_v46 = vpop.permute.xlu0 %476 }
  0xeb   : > { %v642_v50 = vpop.f32.mrf.mxu0  ;;  %v465_v51 = vpack.c.bf16 %v920_v49, %v918_v48  ;;  %v479_v41 = vlaneseq }
  0xec   : > { %v381_v22 = vadd.f32 %v642_v50, %v904_v30  ;;  %v454_v34 = vsel %vm422_vm15, %v378_v24, %v438_v29  ;;  %v436_v37 = vmul.f32 0.2, %v370_v33  ;;  %vm420_vm1 = vcmp.ge.f32.partialorder %v370_v33, 0.0 }
  0xed   : > { %v372_v52 = vpop.f32.mrf.mxu0  ;;  %v480_v42 = vshrl.u32 %v479_v41, 7 }
  0xee   : > { %v439_v28 = vmul.f32 0.2, %v381_v22  ;;  %vm423_vm14 = vcmp.ge.f32.partialorder %v381_v22, 0.0  ;;  %v373_v31 = vadd.f32 %v904_v30, %v372_v52  ;;  %v452_v39 = vsel %vm420_vm1, %v370_v33, %v436_v37 }
  0xef   : > { %v645_v53 = vpop.f32.mrf.mxu0  ;;  %v481_v43 = vsub.s32 0, %v480_v42 }
  0xf0   : > { %v394_v10 = vadd.f32 %v645_v53, %v904_v30  ;;  %v455_v32 = vsel %vm423_vm14, %v381_v22, %v439_v28  ;;  %v437_v36 = vmul.f32 0.2, %v373_v31  ;;  %vm421_vm0 = vcmp.ge.f32.partialorder %v373_v31, 0.0 }
  0xf1   : > { %v385_v54 = vpop.f32.mrf.mxu0  ;;  %v468_v35 = vpack.c.bf16 %v455_v32, %v454_v34  ;;  %v482_v44 = vrot.slane %v477_v46, %v481_v43 }
  0xf2   : > { %v442_v14 = vmul.f32 0.2, %v394_v10  ;;  %vm426_vm11 = vcmp.ge.f32.partialorder %v394_v10, 0.0  ;;  %v386_v17 = vadd.f32 %v904_v30, %v385_v54  ;;  %v453_v38 = vsel %vm421_vm0, %v373_v31, %v437_v36 }
  0xf3   : > { %v646_v55 = vpop.f32.mrf.mxu0  ;;  %v467_v40 = vpack.c.bf16 %v453_v38, %v452_v39 }
  0xf4   : > { %v397_v8 = vadd.f32 %v646_v55, %v904_v30  ;;  %v458_v18 = vsel %vm426_vm11, %v394_v10, %v442_v14  ;;  %v440_v21 = vmul.f32 0.2, %v386_v17  ;;  %vm424_vm13 = vcmp.ge.f32.partialorder %v386_v17, 0.0 }
  0xf5   : > { %v388_v56 = vpop.f32.mrf.mxu0 }
  0xf6   : > { %v443_v13 = vmul.f32 0.2, %v397_v8  ;;  %vm427_vm10 = vcmp.ge.f32.partialorder %v397_v8, 0.0  ;;  %v389_v15 = vadd.f32 %v904_v30, %v388_v56  ;;  %v456_v25 = vsel %vm424_vm13, %v386_v17, %v440_v21 }
  0xf7   : > { %v649_v57 = vpop.f32.mrf.mxu0 }
  0xf8   : > { %v410_v58 = vadd.f32 %v649_v57, %v904_v30  ;;  %v459_v16 = vsel %vm427_vm10, %v397_v8, %v443_v13  ;;  %v441_v20 = vmul.f32 0.2, %v389_v15  ;;  %vm425_vm12 = vcmp.ge.f32.partialorder %v389_v15, 0.0 }
  0xf9   : > { %v401_v59 = vpop.f32.mrf.mxu0  ;;  %v470_v19 = vpack.c.bf16 %v459_v16, %v458_v18 }
  0xfa   : > { %v446_v61 = vmul.f32 0.2, %v410_v58  ;;  %vm430_vm6 = vcmp.ge.f32.partialorder %v410_v58, 0.0  ;;  %v402_v2 = vadd.f32 %v904_v30, %v401_v59  ;;  %v457_v23 = vsel %vm425_vm12, %v389_v15, %v441_v20 }
  0xfb   : > { %v650_v60 = vpop.f32.mrf.mxu0  ;;  %v469_v26 = vpack.c.bf16 %v457_v23, %v456_v25 }
  0xfc   : > { %v413_v62 = vadd.f32 %v650_v60, %v904_v30  ;;  %v462_v3 = vsel %vm430_vm6, %v410_v58, %v446_v61  ;;  %v444_v7 = vmul.f32 0.2, %v402_v2  ;;  %vm428_vm9 = vcmp.ge.f32.partialorder %v402_v2, 0.0 }
  0xfd   : > { %v404_v63 = vpop.f32.mrf.mxu0 }
  0xfe   : > { %v447_v0 = vmul.f32 0.2, %v413_v62  ;;  %v405_v1 = vadd.f32 %v904_v30, %v404_v63  ;;  %vm431_vm7 = vcmp.ge.f32.partialorder %v413_v62, 0.0  ;;  %v460_v11 = vsel %vm428_vm9, %v402_v2, %v444_v7  ;;  %v464_v30 = vld [vmem:[%s1002_s3] sm:$0x1] }
 0x100   : > { %v463_v4 = vsel %vm431_vm7, %v413_v62, %v447_v0  ;;  %v445_v6 = vmul.f32 0.2, %v405_v1  ;;  %vm429_vm8 = vcmp.ge.f32.partialorder %v405_v1, 0.0 }
 0x101   : > { %v472_v5 = vpack.c.bf16 %v463_v4, %v462_v3 }
 0x102   : > { %v461_v9 = vsel %vm429_vm8, %v405_v1, %v445_v6 }
 0x103   : > { %652 = vmatpush3.bf16.xpose.msra.mxu1 %v472_v5  ;;  %v471_v12 = vpack.c.bf16 %v461_v9, %v460_v11 }
 0x104   : > { %653 = vmatprep.subr.bf16.mxu1 %v778_v27 }
 0x10b   : > { %654 = vmatpush3.bf16.xpose.msra.mxu1 %v471_v12 }
 0x10c   : > { %655 = vmatprep.subr.bf16.mxu1 %v778_v27 }
 0x113   : > { %656 = vmatpush3.bf16.xpose.msra.mxu1 %v470_v19 }
 0x114   : > { %657 = vmatprep.subr.bf16.mxu1 %v778_v27 }
 0x11b   : > { %658 = vmatpush3.bf16.xpose.msra.mxu1 %v469_v26 }
 0x11c   : > { %659 = vmatprep.subr.bf16.mxu1 %v778_v27 }
 0x123   : > { %660 = vmatpush3.bf16.xpose.msra.mxu1 %v468_v35 }
 0x124   : > { %661 = vmatprep.subr.bf16.mxu1 %v778_v27 }
 0x12b   : > { %662 = vmatpush3.bf16.xpose.msra.mxu1 %v467_v40 }
 0x12c   : > { %663 = vmatprep.subr.bf16.mxu1 %v778_v27 }
 0x133   : > { %664 = vmatpush3.bf16.xpose.msra.mxu1 %v466_v47 }
 0x134   : > { %665 = vmatprep.subr.bf16.mxu1 %v778_v27 }
 0x13b   : > { %666 = vmatpush3.bf16.xpose.msra.mxu1 %v465_v51 }
 0x142   : > { %668 = vmatmul.mubr.bf16.vlgmr.msra.gmra.mxu1 %v464_v30 }
 0x202   : > { %v517_v45 = vpop.f32.mrf.mxu1 }
 0x203   : > { %v518_v27 = vadd.f32 %v517_v45, %v482_v44 }
 0x204   : > { %v669_v47 = vpop.f32.mrf.mxu1 }
 0x205   : > { %523 = vst [vmem:[%s231_s24] sm:$0x1] %v518_v27 }
 0x206   : > { %v520_v48 = vpop.f32.mrf.mxu1 }
 0x207   : > { %729 = shalt.err (!%p726_p3)
}
 0x208   : > { %s730_s8 = scalar_lea.hbm %s958_s7, 16  ;;  %s734_s16 = scalar_lea.hbm %s1004_s5, 32 }
 0x209   : > { %p731_p4 = scmp.ne.s32.totalorder %s958_s7, %s730_s8  ;;  %p735_p9 = scmp.lt.s32.totalorder %s958_s7, %s1004_s5 }
 0x20a   : > { %p736_p10 = scmp.lt.s32.totalorder %s734_s16, %s730_s8 }
 0x20b   : > { %p732_p7 = pnand %p731_p4, %p850_p5 }
 0x20c   : > { %p737_p11 = por %p736_p10, %p735_p9 }
 0x20d   : > { %p733_p8 = pneg %p732_p7 }
 0x20f   : > { %p738_p12 = pnand %p737_p11, %p733_p8 }
 0x211   : > { %741 = shalt.err (!%p738_p12)
}
 0x212   : > { %671 = dma.vmem_to_hbm [thread:$0]  (%p850_p5), %s960_s26, 16, %s958_s7, %s525_s9   ;;  %v670_v49 = vpop.f32.mrf.mxu1 }
 0x213 PF: > { %p677_p13 = scmp.ge.s32.totalorder %s776_s23, 2  ;;  %s549_s19 = sand.u32 1, %s764_s20  }
 0x214   : > { %s550_s4 = scalar_lea.sflag [#allocation4], %s549_s19 }
 0x215   : > { %p674_p0 = pnand %p677_p13, %p854_p6 }
 0x217   : > { %p675_p1 = pneg %p674_p0 }
 0x219   : > { %759 = dma.done.wait (%p675_p1), %s550_s4, 16  }
 0x21a   : > { %761 = vsyncadd (%p675_p1), %s550_s4, 4294967280  ;;  %p17_p2 = scmp.ge.s32.totalorder %s838_s25, 4   ;;  %s1007_s20 = smov %s768_s21 }
 0x21b   : > { %s1008_s21 = smov %s772_s22  ;;  %s1009_s22 = smov %s848_s28 }
 0x21c   : > { %s1010_s23 = smov %s838_s25  ;;  %19 = sbr.rel (!%p17_p2) target bundleno = 6 (0x6), region = 75 }
 0x221   :  { %554 = vsyncpa [#allocation4], 1 }
 0x222   :  { %556 = vsyncpa [#allocation4 + $0x1], 1 }

// kernel: tpu_custom_call.1
= control target key start
LH: loop header
LB: loop body
LE: loop exit
PB: predicated region body
PF: predicated region fallthrough
CT: control target
= control target key end

     0   :  { %s999_s0 = inlined_call_operand.vmem [shape: f32[200,32], index: 0, kind: input, shape index: {}]   ;;  %s1000_s1 = inlined_call_operand.vmem [shape: bf16[32,128], index: 1, kind: input, shape index: {}]   ;;  %s1001_s2 = inlined_call_operand.vmem [shape: f32[1,128], index: 2, kind: input, shape index: {}]   ;;  %s1002_s3 = inlined_call_operand.vmem [shape: bf16[1,128], index: 3, kind: input, shape index: {}]   ;;  %s1003_s4 = inlined_call_operand.<no memory space> [shape: f32[1,1], index: 4, kind: input, shape index: {}]   ;;  %s1004_s5 = inlined_call_operand.hbm [shape: f32[2,1,128], index: 5, kind: output, shape index: {}]  }
   0x1   :  { %v10_v0 = vstv %s1003_s4 }
   0x2   :  { %11 = vst [vmem:[#allocation2] sm:$0x1] %v10_v0 }
   0x3   :  { %12 = vsyncpa [#allocation4], 0 }
   0x4   :  { %14 = vsyncpa [#allocation4 + $0x1], 0  ;;  %s815_s20 = smov 0   ;;  %s817_s21 = smov 0  }
   0x5   :  { %s819_s22 = smov 0   ;;  %s821_s23 = smov 0  }
   0x6 LB: > { %s591_s4 = sadd.s32 4294967295, %s776_s23   ;;  %s592_s24 = sadd.s32 4294967294, %s776_s23   ;;  %s776_s23 = sphi %s821_s23, %s1010_s23   ;;  %s772_s22 = sphi %s819_s22, %s1009_s22   ;;  %s768_s21 = sphi %s817_s21, %s1008_s21   ;;  %s764_s20 = sphi %s815_s20, %s1007_s20  }
   0x7   : > { %s838_s25 = sadd.s32 1, %s776_s23   ;;  %s137_s26 = sadd.s32 1, %s772_s22 }
   0x8   : > { %s134_s27 = ssub.s32 %s776_s23, %s838_s25  ;;  %p147_p0 = scmp.ne.s32.totalorder %s772_s22, %s768_s21 }
   0x9   : > { %p135_p1 = scmp.eq.s32.totalorder %s134_s27, 0  ;;  %p148_p2 = scmp.eq.s32.totalorder %s591_s4, 1 }
   0xa   : > { %p153_p3 = scmp.ne.s32.totalorder %s768_s21, %s764_s20  ;;  %p154_p4 = scmp.eq.s32.totalorder %s592_s24, 1 }
   0xb   : > { %s848_s28 = scalar_select %p135_p1, %s772_s22, %s137_s26  }
   0xc   : > { %p850_p5 = por %p148_p2, %p147_p0  ;;  %p854_p6 = por %p154_p4, %p153_p3 }
   0xd   : > { %p595_p7 = scmp.ge.s32.totalorder %s776_s23, 1  ;;  %p201_p8 = scmp.lt.s32.totalorder %s776_s23, 3 }
   0xf   : > { %p202_p9 = pnand %p595_p7, %p201_p8 }
  0x10   : > { %s863_s8 = sshll.u32 (!%p202_p9), %s591_s4, 4  ;;  %s230_s4 = sand.u32 (!%p202_p9), 1, %s768_s21  }
  0x11   : > { %205 = sbr.rel (%p202_p9) target bundleno = 531 (0x213), region = 40  ;;  %p237_p10 = scmp.lt.s32.totalorder (!%p202_p9), %s863_s8, 24 }
  0x12   : > { %s231_s24 = scalar_lea.vmem (!%p202_p9), [#allocation3], %s230_s4  ;;  %s958_s7 = scalar_lea.hbm (!%p202_p9), %s1004_s5, %s863_s8 }
  0x13   : > { %s537_s26 = sshll.u32 (!%p202_p9), %s231_s24, 4  ;;  %s525_s9 = scalar_lea.sflag (!%p202_p9), [#allocation4], %s230_s4  ;;  %s960_s26 = int_to_ptr.vmem [resolvable:$true] %s537_s26 }
  0x14   : > { %s716_s10 = scalar_lea.vmem (!%p202_p9), %s960_s26, 16 }
  0x15   : > { %p717_p11 = scmp.ne.s32.totalorder (!%p202_p9), %s960_s26, %s716_s10 }
  0x16   : > { %v714_v1 = vld [vmem:[%s1000_s1 + $0x8] sm:$0xff]   ;;  %v715_v2 = vld [vmem:[%s1000_s1] sm:$0xff]   ;;  %s238_s11 = scalar_select %p237_p10, %s863_s8, 24  ;;  %vm294_vm0 = vcmask 261120   ;;  %v778_v27 = vmov 0.0   ;;  %vm779_vm1 = vmmov 0  }
  0x17   : > { %631 = vmatprep.subr.bf16.mxu0 %v714_v1  ;;  %651 = vmatprep.subr.bf16.mxu1 %v778_v27  ;;  %v473_v28 = vld [vmem:[#allocation2] sm:$0x1]  ;;  %v780_v29 = vmov 0   ;;  %p718_p12 = pnand %p717_p11, %p850_p5 }
  0x18   : > { %632 = vmatpush3.bf16.msra.mxu0 %v714_v1  ;;  %s597_s12 = sshll.u32 %s238_s11, 3  ;;  %667 = vmatprep.mubr.msk.bf16.mxu1 %vm779_vm1, %v778_v27  ;;  %v904_v30 = vld [vmem:[%s1001_s2] ss:$0 sm:$0xff]  ;;  %s781_s11 = smov [#allocation3]  }
  0x19   : > { %633 = vmatprep.subr.bf16.mxu0 %v715_v2  ;;  %s873_s15 = scalar_lea.vmem %s999_s0, %s597_s12  ;;  %713 = vset.pattern.permute.xlu0 %v780_v29  ;;  %p719_p13 = pneg %p718_p12 }
  0x1a   : > { %v247_v3 = vld [vmem:[%s873_s15] sm:$0xff]  ;;  %v248_v4 = vld [vmem:[%s873_s15 + $0x8] sm:$0xff]  ;;  %v249_v5 = vld [vmem:[%s873_s15 + $0x10] sm:$0xff]  ;;  %476 = vperm.xlu0 %713, %v473_v28   ;;  %s720_s12 = sshll.u32 %s781_s11, 4  ;;  %s721_s12 = int_to_ptr.vmem [resolvable:$false] %s720_s12 }
  0x1b   : > { %v263_v6 = vpack.c.bf16 %v248_v4, %v247_v3  ;;  %v250_v7 = vld [vmem:[%s873_s15 + $0x18] sm:$0xff]  ;;  %v251_v8 = vld [vmem:[%s873_s15 + $0x20] sm:$0xff]  ;;  %v252_v9 = vld [vmem:[%s873_s15 + $0x28] sm:$0xff]  ;;  %s722_s13 = scalar_lea.vmem %s721_s12, 32  ;;  %p723_p0 = scmp.lt.s32.totalorder %s960_s26, %s721_s12 }
  0x1c   : > { %634 = vmatpush3.bf16.msra.mxu0 %v715_v2  ;;  %v264_v10 = vpack.c.bf16 %v250_v7, %v249_v5  ;;  %v265_v11 = vpack.c.bf16 %v252_v9, %v251_v8  ;;  %v253_v12 = vld [vmem:[%s873_s15 + $0x30] sm:$0xff]  ;;  %v254_v13 = vld [vmem:[%s873_s15 + $0x38] sm:$0xff]  ;;  %v255_v14 = vld [vmem:[%s873_s15 + $0x40] sm:$0xff]  ;;  %p724_p1 = scmp.lt.s32.totalorder %s722_s13, %s716_s10 }
  0x1d   : > { %635 = vmatprep.mubr.msk.bf16.mxu0 %vm294_vm0, %v263_v6  ;;  %v256_v15 = vld [vmem:[%s873_s15 + $0x48] sm:$0xff]  ;;  %v266_v16 = vpack.c.bf16 %v254_v13, %v253_v12  ;;  %v257_v18 = vld [vmem:[%s873_s15 + $0x50] sm:$0xff]  ;;  %v258_v19 = vld [vmem:[%s873_s15 + $0x58] sm:$0xff] }
  0x1e   : > { %v267_v17 = vpack.c.bf16 %v256_v15, %v255_v14  ;;  %v259_v20 = vld [vmem:[%s873_s15 + $0x60] sm:$0xff]  ;;  %v260_v21 = vld [vmem:[%s873_s15 + $0x68] sm:$0xff]  ;;  %v268_v22 = vpack.c.bf16 %v258_v19, %v257_v18  ;;  %v261_v24 = vld [vmem:[%s873_s15 + $0x70] sm:$0xff]  ;;  %p725_p2 = por %p724_p1, %p723_p0 }
  0x1f   : > { %636 = vmatmul.mubr.msk.bf16.vlgmr.msra.gmra.mxu0 %vm294_vm0, %v264_v10  ;;  %v269_v23 = vpack.c.bf16 %v260_v21, %v259_v20  ;;  %v262_v25 = vld [vmem:[%s873_s15 + $0x78] sm:$0xff] }
  0x20   : > { %639 = vmatprep.mubr.msk.bf16.mxu0 %vm294_vm0, %v265_v11  ;;  %v270_v26 = vpack.c.bf16 %v262_v25, %v261_v24  ;;  %p726_p3 = pnand %p725_p2, %p719_p13 }
  0x27   : > { %640 = vmatmul.mubr.msk.bf16.gmra.mxu0 %vm294_vm0, %v266_v16 }
  0x28   : > { %643 = vmatprep.mubr.msk.bf16.mxu0 %vm294_vm0, %v267_v17 }
  0x2f   : > { %644 = vmatmul.mubr.msk.bf16.gmra.mxu0 %vm294_vm0, %v268_v22 }
  0x30   : > { %647 = vmatprep.mubr.msk.bf16.mxu0 %vm294_vm0, %v269_v23 }
  0x37   : > { %648 = vmatmul.mubr.msk.bf16.gmra.mxu0 %vm294_vm0, %v270_v26 }
  0xdf   : > { %v637_v31 = vpop.f32.mrf.mxu0 }
  0xe0   : > { %v362_v32 = vadd.f32 %v637_v31, %v904_v30 }
  0xe1   : > { %v353_v33 = vpop.f32.mrf.mxu0 }
  0xe2   : > { %v354_v34 = vadd.f32 %v904_v30, %v353_v33  ;;  %v434_v36 = vmul.f32 0.2, %v362_v32  ;;  %vm418_vm2 = vcmp.ge.f32.partialorder %v362_v32, 0.0 }
  0xe3   : > { %v638_v35 = vpop.f32.mrf.mxu0 }
  0xe4   : > { %v365_v37 = vadd.f32 %v638_v35, %v904_v30  ;;  %v432_v39 = vmul.f32 0.2, %v354_v34  ;;  %vm416_vm4 = vcmp.ge.f32.partialorder %v354_v34, 0.0  ;;  %v910_v44 = vsel %vm418_vm2, %v362_v32, %v434_v36 }
  0xe5   : > { %v356_v38 = vpop.f32.mrf.mxu0 }
  0xe6   : > { %vm419_vm3 = vcmp.ge.f32.partialorder %v365_v37, 0.0  ;;  %v435_v40 = vmul.f32 0.2, %v365_v37  ;;  %v357_v41 = vadd.f32 %v904_v30, %v356_v38  ;;  %v918_v48 = vsel %vm416_vm4, %v354_v34, %v432_v39 }
  0xe7   : > { %v641_v42 = vpop.f32.mrf.mxu0 }
  0xe8   : > { %vm417_vm5 = vcmp.ge.f32.partialorder %v357_v41, 0.0  ;;  %v433_v43 = vmul.f32 0.2, %v357_v41  ;;  %v912_v45 = vsel %vm419_vm3, %v365_v37, %v435_v40  ;;  %v378_v24 = vadd.f32 %v641_v42, %v904_v30 }
  0xe9   : > { %v914_v46 = vpop.f32.mrf.mxu0  ;;  %v466_v47 = vpack.c.bf16 %v912_v45, %v910_v44 }
  0xea   : > { %v920_v49 = vsel %vm417_vm5, %v357_v41, %v433_v43  ;;  %v438_v29 = vmul.f32 0.2, %v378_v24  ;;  %vm422_vm15 = vcmp.ge.f32.partialorder %v378_v24, 0.0  ;;  %v370_v33 = vadd.f32 %v904_v30, %v914_v46  ;;  %v477_v46 = vpop.permute.xlu0 %476 }
  0xeb   : > { %v642_v50 = vpop.f32.mrf.mxu0  ;;  %v465_v51 = vpack.c.bf16 %v920_v49, %v918_v48  ;;  %v479_v41 = vlaneseq }
  0xec   : > { %v381_v22 = vadd.f32 %v642_v50, %v904_v30  ;;  %v454_v34 = vsel %vm422_vm15, %v378_v24, %v438_v29  ;;  %v436_v37 = vmul.f32 0.2, %v370_v33  ;;  %vm420_vm1 = vcmp.ge.f32.partialorder %v370_v33, 0.0 }
  0xed   : > { %v372_v52 = vpop.f32.mrf.mxu0  ;;  %v480_v42 = vshrl.u32 %v479_v41, 7 }
  0xee   : > { %v439_v28 = vmul.f32 0.2, %v381_v22  ;;  %vm423_vm14 = vcmp.ge.f32.partialorder %v381_v22, 0.0  ;;  %v373_v31 = vadd.f32 %v904_v30, %v372_v52  ;;  %v452_v39 = vsel %vm420_vm1, %v370_v33, %v436_v37 }
  0xef   : > { %v645_v53 = vpop.f32.mrf.mxu0  ;;  %v481_v43 = vsub.s32 0, %v480_v42 }
  0xf0   : > { %v394_v10 = vadd.f32 %v645_v53, %v904_v30  ;;  %v455_v32 = vsel %vm423_vm14, %v381_v22, %v439_v28  ;;  %v437_v36 = vmul.f32 0.2, %v373_v31  ;;  %vm421_vm0 = vcmp.ge.f32.partialorder %v373_v31, 0.0 }
  0xf1   : > { %v385_v54 = vpop.f32.mrf.mxu0  ;;  %v468_v35 = vpack.c.bf16 %v455_v32, %v454_v34  ;;  %v482_v44 = vrot.slane %v477_v46, %v481_v43 }
  0xf2   : > { %v442_v14 = vmul.f32 0.2, %v394_v10  ;;  %vm426_vm11 = vcmp.ge.f32.partialorder %v394_v10, 0.0  ;;  %v386_v17 = vadd.f32 %v904_v30, %v385_v54  ;;  %v453_v38 = vsel %vm421_vm0, %v373_v31, %v437_v36 }
  0xf3   : > { %v646_v55 = vpop.f32.mrf.mxu0  ;;  %v467_v40 = vpack.c.bf16 %v453_v38, %v452_v39 }
  0xf4   : > { %v397_v8 = vadd.f32 %v646_v55, %v904_v30  ;;  %v458_v18 = vsel %vm426_vm11, %v394_v10, %v442_v14  ;;  %v440_v21 = vmul.f32 0.2, %v386_v17  ;;  %vm424_vm13 = vcmp.ge.f32.partialorder %v386_v17, 0.0 }
  0xf5   : > { %v388_v56 = vpop.f32.mrf.mxu0 }
  0xf6   : > { %v443_v13 = vmul.f32 0.2, %v397_v8  ;;  %vm427_vm10 = vcmp.ge.f32.partialorder %v397_v8, 0.0  ;;  %v389_v15 = vadd.f32 %v904_v30, %v388_v56  ;;  %v456_v25 = vsel %vm424_vm13, %v386_v17, %v440_v21 }
  0xf7   : > { %v649_v57 = vpop.f32.mrf.mxu0 }
  0xf8   : > { %v410_v58 = vadd.f32 %v649_v57, %v904_v30  ;;  %v459_v16 = vsel %vm427_vm10, %v397_v8, %v443_v13  ;;  %v441_v20 = vmul.f32 0.2, %v389_v15  ;;  %vm425_vm12 = vcmp.ge.f32.partialorder %v389_v15, 0.0 }
  0xf9   : > { %v401_v59 = vpop.f32.mrf.mxu0  ;;  %v470_v19 = vpack.c.bf16 %v459_v16, %v458_v18 }
  0xfa   : > { %v446_v61 = vmul.f32 0.2, %v410_v58  ;;  %vm430_vm6 = vcmp.ge.f32.partialorder %v410_v58, 0.0  ;;  %v402_v2 = vadd.f32 %v904_v30, %v401_v59  ;;  %v457_v23 = vsel %vm425_vm12, %v389_v15, %v441_v20 }
  0xfb   : > { %v650_v60 = vpop.f32.mrf.mxu0  ;;  %v469_v26 = vpack.c.bf16 %v457_v23, %v456_v25 }
  0xfc   : > { %v413_v62 = vadd.f32 %v650_v60, %v904_v30  ;;  %v462_v3 = vsel %vm430_vm6, %v410_v58, %v446_v61  ;;  %v444_v7 = vmul.f32 0.2, %v402_v2  ;;  %vm428_vm9 = vcmp.ge.f32.partialorder %v402_v2, 0.0 }
  0xfd   : > { %v404_v63 = vpop.f32.mrf.mxu0 }
  0xfe   : > { %v447_v0 = vmul.f32 0.2, %v413_v62  ;;  %v405_v1 = vadd.f32 %v904_v30, %v404_v63  ;;  %vm431_vm7 = vcmp.ge.f32.partialorder %v413_v62, 0.0  ;;  %v460_v11 = vsel %vm428_vm9, %v402_v2, %v444_v7  ;;  %v464_v30 = vld [vmem:[%s1002_s3] sm:$0x1] }
 0x100   : > { %v463_v4 = vsel %vm431_vm7, %v413_v62, %v447_v0  ;;  %v445_v6 = vmul.f32 0.2, %v405_v1  ;;  %vm429_vm8 = vcmp.ge.f32.partialorder %v405_v1, 0.0 }
 0x101   : > { %v472_v5 = vpack.c.bf16 %v463_v4, %v462_v3 }
 0x102   : > { %v461_v9 = vsel %vm429_vm8, %v405_v1, %v445_v6 }
 0x103   : > { %652 = vmatpush3.bf16.xpose.msra.mxu1 %v472_v5  ;;  %v471_v12 = vpack.c.bf16 %v461_v9, %v460_v11 }
 0x104   : > { %653 = vmatprep.subr.bf16.mxu1 %v778_v27 }
 0x10b   : > { %654 = vmatpush3.bf16.xpose.msra.mxu1 %v471_v12 }
 0x10c   : > { %655 = vmatprep.subr.bf16.mxu1 %v778_v27 }
 0x113   : > { %656 = vmatpush3.bf16.xpose.msra.mxu1 %v470_v19 }
 0x114   : > { %657 = vmatprep.subr.bf16.mxu1 %v778_v27 }
 0x11b   : > { %658 = vmatpush3.bf16.xpose.msra.mxu1 %v469_v26 }
 0x11c   : > { %659 = vmatprep.subr.bf16.mxu1 %v778_v27 }
 0x123   : > { %660 = vmatpush3.bf16.xpose.msra.mxu1 %v468_v35 }
 0x124   : > { %661 = vmatprep.subr.bf16.mxu1 %v778_v27 }
 0x12b   : > { %662 = vmatpush3.bf16.xpose.msra.mxu1 %v467_v40 }
 0x12c   : > { %663 = vmatprep.subr.bf16.mxu1 %v778_v27 }
 0x133   : > { %664 = vmatpush3.bf16.xpose.msra.mxu1 %v466_v47 }
 0x134   : > { %665 = vmatprep.subr.bf16.mxu1 %v778_v27 }
 0x13b   : > { %666 = vmatpush3.bf16.xpose.msra.mxu1 %v465_v51 }
 0x142   : > { %668 = vmatmul.mubr.bf16.vlgmr.msra.gmra.mxu1 %v464_v30 }
 0x202   : > { %v517_v45 = vpop.f32.mrf.mxu1 }
 0x203   : > { %v518_v27 = vadd.f32 %v517_v45, %v482_v44 }
 0x204   : > { %v669_v47 = vpop.f32.mrf.mxu1 }
 0x205   : > { %523 = vst [vmem:[%s231_s24] sm:$0x1] %v518_v27 }
 0x206   : > { %v520_v48 = vpop.f32.mrf.mxu1 }
 0x207   : > { %729 = shalt.err (!%p726_p3)
}
 0x208   : > { %s730_s8 = scalar_lea.hbm %s958_s7, 16  ;;  %s734_s16 = scalar_lea.hbm %s1004_s5, 32 }
 0x209   : > { %p731_p4 = scmp.ne.s32.totalorder %s958_s7, %s730_s8  ;;  %p735_p9 = scmp.lt.s32.totalorder %s958_s7, %s1004_s5 }
 0x20a   : > { %p736_p10 = scmp.lt.s32.totalorder %s734_s16, %s730_s8 }
 0x20b   : > { %p732_p7 = pnand %p731_p4, %p850_p5 }
 0x20c   : > { %p737_p11 = por %p736_p10, %p735_p9 }
 0x20d   : > { %p733_p8 = pneg %p732_p7 }
 0x20f   : > { %p738_p12 = pnand %p737_p11, %p733_p8 }
 0x211   : > { %741 = shalt.err (!%p738_p12)
}
 0x212   : > { %671 = dma.vmem_to_hbm [thread:$0]  (%p850_p5), %s960_s26, 16, %s958_s7, %s525_s9   ;;  %v670_v49 = vpop.f32.mrf.mxu1 }
 0x213 PF: > { %p677_p13 = scmp.ge.s32.totalorder %s776_s23, 2  ;;  %s549_s19 = sand.u32 1, %s764_s20  }
 0x214   : > { %s550_s4 = scalar_lea.sflag [#allocation4], %s549_s19 }
 0x215   : > { %p674_p0 = pnand %p677_p13, %p854_p6 }
 0x217   : > { %p675_p1 = pneg %p674_p0 }
 0x219   : > { %759 = dma.done.wait (%p675_p1), %s550_s4, 16  }
 0x21a   : > { %761 = vsyncadd (%p675_p1), %s550_s4, 4294967280  ;;  %p17_p2 = scmp.ge.s32.totalorder %s838_s25, 4   ;;  %s1007_s20 = smov %s768_s21 }
 0x21b   : > { %s1008_s21 = smov %s772_s22  ;;  %s1009_s22 = smov %s848_s28 }
 0x21c   : > { %s1010_s23 = smov %s838_s25  ;;  %19 = sbr.rel (!%p17_p2) target bundleno = 6 (0x6), region = 75 }
 0x221   :  { %554 = vsyncpa [#allocation4], 1 }
 0x222   :  { %556 = vsyncpa [#allocation4 + $0x1], 1 }

</bundles_post_ra>
